<compile_context>
chip_gen: v6e
topology: v6e:2x2x1
jax: 0.10.0
libtpu: 0.0.40
codegen_flags: <defaults>
</compile_context>

<pallas_src>
import jax
import jax.numpy as jnp
from jax.experimental import pallas as pl
from jax.experimental.pallas import tpu as pltpu


_MIN_SUBLANE = 8          # sublane granularity for batch tiles
_LANE = 128               # lane granularity for reduction tiles
_X_TILE_BYTES = 4 << 20   # per-buffer activation budget (double-buffered => 8 MiB)
_MAX_TB = 1024            # rows-per-tile cap (4 MiB f32 tiles already ~HBM roofline)


def _round_up(x, m):
    return ((x + m - 1) // m) * m


def _choose_tiles(B, D, itemsize, max_rows_per_tile=None, max_cols_per_tile=None):
    """Pick (TB, TD, B_pad, D_pad) respecting the (8, 128) block constraint."""
    # --- reduction (D) tile: keep full D unless it would blow the VMEM budget ---
    td = D
    if max_cols_per_tile is not None and max_cols_per_tile < D:
        td = max(_LANE, (max_cols_per_tile // _LANE) * _LANE)
    elif _MIN_SUBLANE * D * itemsize > _X_TILE_BYTES:
        td = max(_LANE, (_X_TILE_BYTES // (_MIN_SUBLANE * itemsize)) // _LANE * _LANE)
    if td >= D:
        td, d_pad = D, D                       # full D: block dim == array dim
    else:
        d_pad = _round_up(D, td)               # td is a multiple of 128

    # --- batch (B) tile: as many rows as the per-buffer budget allows ---
    tb = max(_MIN_SUBLANE, _X_TILE_BYTES // max(1, td * itemsize))
    tb = min(tb, _MAX_TB)
    if max_rows_per_tile is not None:
        tb = min(tb, max(1, max_rows_per_tile))
    tb = max(_MIN_SUBLANE, (tb // _MIN_SUBLANE) * _MIN_SUBLANE)
    if tb >= B:
        tb, b_pad = B, B                       # single tile: block dim == array dim
    else:
        b_pad = _round_up(B, tb)               # tb is a multiple of 8
    return tb, td, b_pad, d_pad


def _discriminator_kernel(b_sref, x_ref, w_ref, o_ref, acc_ref):
    # b_sref: (1,) f32 in SMEM (scalar prefetch)
    # x_ref : (TB, TD) native dtype, w_ref: (1, TD), o_ref: (TB, 1), acc: (TB, 1) f32
    k = pl.program_id(1)

    @pl.when(k == 0)
    def _():
        acc_ref[...] = jnp.zeros_like(acc_ref)

    # f32 accumulation inside the kernel; inputs stay narrow in HBM.
    x = x_ref[...].astype(jnp.float32)                       # (TB, TD)
    w = w_ref[...].astype(jnp.float32)                       # (1, TD) broadcast over rows
    acc_ref[...] += jnp.sum(x * w, axis=-1, keepdims=True)   # VPU mul + XLU lane-reduce

    @pl.when(k == pl.num_programs(1) - 1)
    def _():
        logits = acc_ref[...] + b_sref[0]
        o_ref[...] = (1.0 / (1.0 + jnp.exp(-logits))).astype(o_ref.dtype)


def discriminator_forward(encoded_batch, weight, bias,
                          max_rows_per_tile=None, max_cols_per_tile=None):
    """
    encoded_batch: [B, C, W, H] (real or complex), any float dtype
    weight:        [1, D] with D = C*W*H   (nn.Linear(discrim_shape, 1).weight)
    bias:          [1]                     (nn.Linear(discrim_shape, 1).bias)
    returns:       [B, 1] predictions in (0, 1), dtype of the (real) input
    """
    # Layout-only glue: .real + flatten.  NO dtype upcast here (keeps HBM traffic low).
    x = jnp.real(encoded_batch)
    B = x.shape[0]
    x = x.reshape(B, -1)                                     # [B, D], native dtype
    D = x.shape[1]
    out_dtype = x.dtype

    itemsize = jnp.dtype(x.dtype).itemsize
    tb, td, b_pad, d_pad = _choose_tiles(B, D, itemsize,
                                         max_rows_per_tile, max_cols_per_tile)
    nb = b_pad // tb
    nk = d_pad // td

    w = weight.reshape(1, D)
    b = bias.reshape(1).astype(jnp.float32)                  # SMEM scalar prefetch

    # Zero-pad to tile multiples (zeros don't change the dot product; padded
    # output rows are sliced away below).
    if b_pad != B or d_pad != D:
        x = jnp.pad(x, ((0, b_pad - B), (0, d_pad - D)))
    if d_pad != D:
        w = jnp.pad(w, ((0, 0), (0, d_pad - D)))

    out = pl.pallas_call(
        _discriminator_kernel,
        out_shape=jax.ShapeDtypeStruct((b_pad, 1), out_dtype),
        grid_spec=pltpu.PrefetchScalarGridSpec(
            num_scalar_prefetch=1,                            # bias -> SMEM
            grid=(nb, nk),                                    # reduction axis last
            in_specs=[
                pl.BlockSpec((tb, td), lambda i, k, b_ref: (i, k)),   # activations
                pl.BlockSpec((1, td), lambda i, k, b_ref: (0, k)),    # weight (VMEM-resident over i)
            ],
            out_specs=pl.BlockSpec((tb, 1), lambda i, k, b_ref: (i, 0)),
            scratch_shapes=[pltpu.VMEM((tb, 1), jnp.float32)],        # f32 accumulator
        ),
        compiler_params=pltpu.CompilerParams(
            dimension_semantics=("parallel", "arbitrary")),   # batch split across TCs (v7x)
    )(b, x, w)
    return out[:B]


def init_params(key, discrim_shape):
    """Deterministic nn.Linear(discrim_shape, 1)-style init."""
    k_w, k_b = jax.random.split(key)
    bound = 1.0 / jnp.sqrt(float(discrim_shape))
    weight = jax.random.uniform(k_w, (1, discrim_shape), jnp.float32,
                                minval=-bound, maxval=bound)
    bias = jax.random.uniform(k_b, (1,), jnp.float32,
                              minval=-bound, maxval=bound)
    return weight, bias


if __name__ == "__main__":
    key = jax.random.PRNGKey(0)
    k_x, k_p, k_x2, k_x3 = jax.random.split(key, 4)

    # Small shapes consistent with the module's [B, C, W, H] input.
    B, C, W, H = 2, 4, 16, 16
    discrim_shape = C * W * H

    weight, bias = init_params(k_p, discrim_shape)

    def ref_fwd(inp):
        xf = inp.reshape(inp.shape[0], -1).astype(jnp.float32)
        return jax.nn.sigmoid(xf @ weight.T + bias)

    # 1) Default path (single batch tile, single reduction step).
    x = jax.random.normal(k_x, (B, C, W, H), jnp.float32)
    preds = jax.block_until_ready(discriminator_forward(x, weight, bias))
    assert preds.shape == (B, 1)
    assert jnp.allclose(preds, ref_fwd(x), atol=1e-5, rtol=1e-5)

    # 2) Multi batch-tile path with batch padding (B=40, TB=16 -> 3 tiles).
    x2 = jax.random.normal(k_x2, (40, C, W, H), jnp.float32)
    p2 = jax.block_until_ready(
        discriminator_forward(x2, weight, bias, max_rows_per_tile=16))
    assert p2.shape == (40, 1)
    assert jnp.allclose(p2, ref_fwd(x2), atol=1e-5, rtol=1e-5)

    # 3) Reduction-tiled path with D padding (D=1024, TD=384 -> 3 k-steps).
    x3 = jax.random.normal(k_x3, (16, C, W, H), jnp.float32)
    p3 = jax.block_until_ready(
        discriminator_forward(x3, weight, bias, max_cols_per_tile=384))
    assert p3.shape == (16, 1)
    assert jnp.allclose(p3, ref_fwd(x3), atol=1e-5, rtol=1e-5)

    print("KERNEL_OK")
</pallas_src>

<mosaic_0001>
module attributes {stable_mosaic.version = 11 : i64} {
  func.func @_discriminator_kernel(%arg0: i32, %arg1: i32, %arg2: memref<1xf32, #tpu.memory_space<smem>>, %arg3: memref<2x1024xf32, #tpu.memory_space<vmem>>, %arg4: memref<1x1024xf32, #tpu.memory_space<vmem>>, %arg5: memref<2x1xf32, #tpu.memory_space<vmem>>, %arg6: memref<2x1xf32, #tpu.memory_space<vmem>>) attributes {dimension_semantics = [#tpu.dimension_semantics<parallel>, #tpu.dimension_semantics<arbitrary>], iteration_bounds = array<i64: 1, 1>, scalar_prefetch = 1 : i64, scratch_operands = 1 : i64, tpu.core_type = #tpu.core_type<tc>, window_params = [{transform_indices = @transform_0, window_bounds = array<i64: 2, 1024>}, {transform_indices = @transform_1, window_bounds = array<i64: 1, 1024>}, {transform_indices = @transform_2, window_bounds = array<i64: 2, 1>}]} {
    %c0_i32 = arith.constant 0 : i32
    %0 = arith.cmpi eq, %arg1, %c0_i32 : i32
    %1 = arith.extui %0 : i1 to i32
    %c0_i32_0 = arith.constant 0 : i32
    %2 = arith.cmpi ne, %1, %c0_i32_0 : i32
    scf.if %2 {
      %cst_10 = arith.constant 0.000000e+00 : f32
      %15 = vector.broadcast %cst_10 : f32 to vector<2x1xf32>
      %c0_11 = arith.constant 0 : index
      %c0_12 = arith.constant 0 : index
      %16 = vector.load %arg6[%c0_11, %c0_12] : memref<2x1xf32, #tpu.memory_space<vmem>>, vector<2x1xf32>
      tpu.vector_store %arg6[%c0_11, %c0_12], %15 {strides = array<i32>} : memref<2x1xf32, #tpu.memory_space<vmem>>, vector<2x1xf32>,
    } else {
    }
    %c0 = arith.constant 0 : index
    %c0_1 = arith.constant 0 : index
    %3 = vector.load %arg3[%c0, %c0_1] : memref<2x1024xf32, #tpu.memory_space<vmem>>, vector<2x1024xf32>
    %c0_2 = arith.constant 0 : index
    %c0_3 = arith.constant 0 : index
    %4 = vector.load %arg4[%c0_2, %c0_3] : memref<1x1024xf32, #tpu.memory_space<vmem>>, vector<1x1024xf32>
    %c0_4 = arith.constant 0 : index
    %c0_5 = arith.constant 0 : index
    %5 = vector.load %arg6[%c0_4, %c0_5] : memref<2x1xf32, #tpu.memory_space<vmem>>, vector<2x1xf32>
    %6 = vector.broadcast %4 : vector<1x1024xf32> to vector<2x1024xf32>
    %7 = arith.mulf %3, %6 : vector<2x1024xf32>
    %cst = arith.constant dense<0.000000e+00> : vector<2xf32>
    %8 = vector.multi_reduction <add>, %7, %cst [1] : vector<2x1024xf32> to vector<2xf32>
    %9 = vector.shape_cast %8 : vector<2xf32> to vector<2x1xf32>
    %10 = arith.addf %5, %9 : vector<2x1xf32>
    %c0_6 = arith.constant 0 : index
    %c0_7 = arith.constant 0 : index
    %11 = vector.load %arg6[%c0_6, %c0_7] : memref<2x1xf32, #tpu.memory_space<vmem>>, vector<2x1xf32>
    tpu.vector_store %arg6[%c0_6, %c0_7], %10 {strides = array<i32>} : memref<2x1xf32, #tpu.memory_space<vmem>>, vector<2x1xf32>,
    %c0_i32_8 = arith.constant 0 : i32
    %12 = arith.cmpi eq, %arg1, %c0_i32_8 : i32
    %13 = arith.extui %12 : i1 to i32
    %c0_i32_9 = arith.constant 0 : i32
    %14 = arith.cmpi ne, %13, %c0_i32_9 : i32
    scf.if %14 {
      %c0_10 = arith.constant 0 : index
      %c0_11 = arith.constant 0 : index
      %15 = vector.load %arg6[%c0_10, %c0_11] : memref<2x1xf32, #tpu.memory_space<vmem>>, vector<2x1xf32>
      %c0_12 = arith.constant 0 : index
      %16 = memref.load %arg2[%c0_12] : memref<1xf32, #tpu.memory_space<smem>>
      %17 = vector.broadcast %16 : f32 to vector<2x1xf32>
      %18 = arith.addf %15, %17 : vector<2x1xf32>
      %cst_13 = arith.constant 0.000000e+00 : f32
      %19 = vector.broadcast %cst_13 : f32 to vector<2x1xf32>
      %20 = arith.subf %19, %18 : vector<2x1xf32>
      %21 = math.exp %20 : vector<2x1xf32>
      %cst_14 = arith.constant 1.000000e+00 : f32
      %22 = vector.broadcast %cst_14 : f32 to vector<2x1xf32>
      %23 = arith.addf %22, %21 : vector<2x1xf32>
      %cst_15 = arith.constant 1.000000e+00 : f32
      %24 = vector.broadcast %cst_15 : f32 to vector<2x1xf32>
      %25 = arith.divf %24, %23 : vector<2x1xf32>
      %c0_16 = arith.constant 0 : index
      %c0_17 = arith.constant 0 : index
      %26 = vector.load %arg5[%c0_16, %c0_17] : memref<2x1xf32, #tpu.memory_space<vmem>>, vector<2x1xf32>
      tpu.vector_store %arg5[%c0_16, %c0_17], %25 {strides = array<i32>} : memref<2x1xf32, #tpu.memory_space<vmem>>, vector<2x1xf32>,
    } else {
    }
    return
  }
  func.func @transform_0(%arg0: i32, %arg1: i32, %arg2: memref<1xf32, #tpu.memory_space<smem>>) -> (i32, i32) {
    %c0_i32 = arith.constant 0 : i32
    return %arg0, %arg1 : i32, i32
  }
  func.func @transform_1(%arg0: i32, %arg1: i32, %arg2: memref<1xf32, #tpu.memory_space<smem>>) -> (i32, i32) {
    %c0_i32 = arith.constant 0 : i32
    %c0_i32_0 = arith.constant 0 : i32
    return %c0_i32, %arg1 : i32, i32
  }
  func.func @transform_2(%arg0: i32, %arg1: i32, %arg2: memref<1xf32, #tpu.memory_space<smem>>) -> (i32, i32) {
    %c0_i32 = arith.constant 0 : i32
    %c0_i32_0 = arith.constant 0 : i32
    return %arg0, %c0_i32 : i32, i32
  }
}

</mosaic_0001>

<bundles_post_ra>
// kernel: tpu_custom_call.1
= control target key start
LH: loop header
LB: loop body
LE: loop exit
PB: predicated region body
PF: predicated region fallthrough
CT: control target
= control target key end

     0   :  { %9 = vsyncpa [#allocation6], 0  ;;  %s302_s0 = inlined_call_operand.<no memory space> [shape: f32[1], index: 0, kind: input, shape index: {}]   ;;  %s303_s1 = inlined_call_operand.hbm [shape: f32[2,1024], index: 1, kind: input, shape index: {}]   ;;  %s304_s2 = inlined_call_operand.hbm [shape: f32[1,1024], index: 2, kind: input, shape index: {}]   ;;  %s305_s3 = inlined_call_operand.vmem [shape: f32[2,1], index: 3, kind: output, shape index: {}]  }
   0x1   :  { %10 = vsyncpa [#allocation8], 0  ;;  %s255_s12 = smov [#allocation5]   ;;  %s256_s14 = smov [#allocation7]  }
   0x2   :  { %s17_s13 = sshll.u32 %s255_s12, 4  ;;  %s27_s15 = sshll.u32 %s256_s14, 4  ;;  %s18_s13 = int_to_ptr.vmem [resolvable:$true] %s17_s13  ;;  %s28_s15 = int_to_ptr.vmem [resolvable:$true] %s27_s15 }
   0x3   :  { %s219_s16 = scalar_lea.vmem %s18_s13, 256  ;;  %p224_p1 = scmp.lt.s32.totalorder %s18_s13, %s18_s13 }
   0x4   :  { %p220_p0 = scmp.ne.s32.totalorder %s18_s13, %s219_s16  ;;  %p225_p2 = scmp.lt.s32.totalorder %s219_s16, %s219_s16 }
   0x6   :  { %p226_p3 = por %p225_p2, %p224_p1 }
   0x8   :  { %p227_p4 = pnand %p226_p3, %p220_p0 }
   0xa   :  { %230 = shalt.err (!%p227_p4)
}
   0xb   :  { %20 = dma.hbm_to_vmem [thread:$0]  %s303_s1, 256, %s18_s13, [#allocation6]  }
   0xc   :  { %s239_s19 = scalar_lea.vmem %s28_s15, 128  ;;  %p244_p6 = scmp.lt.s32.totalorder %s28_s15, %s28_s15 }
   0xd   :  { %p240_p5 = scmp.ne.s32.totalorder %s28_s15, %s239_s19  ;;  %p245_p7 = scmp.lt.s32.totalorder %s239_s19, %s239_s19 }
   0xf   :  { %p246_p8 = por %p245_p7, %p244_p6 }
  0x11   :  { %p247_p9 = pnand %p246_p8, %p240_p5 }
  0x13   :  { %250 = shalt.err (!%p247_p9)
}
  0x14   :  { %30 = dma.hbm_to_vmem [thread:$0]  %s304_s2, 128, %s28_s15, [#allocation8]  }
  0x15   :  { %251 = dma.done.wait [#allocation6], 256  }
  0x16   :  { %252 = vsyncadd [#allocation6], 4294967040 }
  0x17   :  { %253 = dma.done.wait [#allocation8], 128  }
  0x18   :  { %254 = vsyncadd [#allocation8], 4294967168  ;;  %v48_v0 = vlaneseq  ;;  %vm41_vm0 = vcmask 1024   ;;  %v257_v1 = vmov 1983009808   ;;  %v258_v4 = vmov 0.0  }
  0x19   :  { %v83_v2 = vunpack.c.l.s4 %v257_v1  ;;  %42 = vst.msk [vmem:[#allocation2] sm:$0x3] %vm41_vm0, %v258_v4  ;;  %v45_v14 = vld [vmem:[#allocation7] sm:$0xff]  ;;  %v43_v30 = vld [vmem:[#allocation5] sm:$0xff]  ;;  %v44_v33 = vld [vmem:[#allocation5 + $0x8] sm:$0xff]  ;;  %vm162_vm1 = vcmask 1041408  }
  0x1a   :  { %v49_v3 = vshrl.u32 %v48_v0, 7 }
  0x1b   :  { %v84_v5 = vunpack.c.0.s8 %v83_v2  ;;  %v188_v2 = vstv %s302_s0 }
  0x1c   :  { %v50_v6 = vsub.s32 0, %v49_v3  ;;  %v54_v7 = vsub.s32 1, %v49_v3  ;;  %v58_v8 = vsub.s32 2, %v49_v3  ;;  %v62_v9 = vsub.s32 3, %v49_v3 }
  0x1d   :  { %v66_v10 = vsub.s32 4, %v49_v3  ;;  %v70_v11 = vsub.s32 5, %v49_v3  ;;  %v74_v12 = vsub.s32 6, %v49_v3  ;;  %v78_v13 = vsub.s32 7, %v49_v3 }
  0x1e   :  { %v87_v15 = vsub.s32 %v84_v5, %v49_v3  ;;  %v51_v16 = vrot.slane %v45_v14, %v50_v6  ;;  %v55_v17 = vrot.slane %v45_v14, %v54_v7  ;;  %v59_v18 = vrot.slane %v45_v14, %v58_v8 }
  0x1f   :  { %v63_v19 = vrot.slane %v45_v14, %v62_v9  ;;  %v67_v20 = vrot.slane %v45_v14, %v66_v10  ;;  %v71_v21 = vrot.slane %v45_v14, %v70_v11  ;;  %v75_v22 = vrot.slane %v45_v14, %v74_v12 }
  0x20   :  { %v79_v23 = vrot.slane %v45_v14, %v78_v13  ;;  %v80_v24 = vcombine.low %v51_v16, %v55_v17  ;;  %v46_v63 = vld [vmem:[#allocation2] sm:$0x3] }
  0x21   :  { %v81_v25 = vcombine.low %v59_v18, %v63_v19  ;;  %v97_v26 = vcombine.low %v67_v20, %v71_v21 }
  0x22   :  { %v98_v27 = vcombine.low %v75_v22, %v79_v23  ;;  %v88_v28 = vrot.slane %v80_v24, %v87_v15 }
  0x23   :  { %v95_v29 = vrot.slane %v81_v25, %v87_v15  ;;  %v105_v31 = vrot.slane %v97_v26, %v87_v15 }
  0x24   :  { %v112_v32 = vrot.slane %v98_v27, %v87_v15 }
  0x25   :  { %v96_v34 = vcombine.low %v88_v28, %v95_v29 }
  0x26   :  { %v113_v35 = vcombine.low %v105_v31, %v112_v32 }
  0x27   :  { %v116_v36 = vmul.f32 %v96_v34, %v43_v30 }
  0x28   :  { %v117_v37 = vmul.f32 %v113_v35, %v44_v33 }
  0x29   :  { %v120_v38 = vcombine.high %v116_v36, %v116_v36  ;;  %v127_v39 = vrot.slane %v116_v36, %v87_v15 }
  0x2a   :  { %v137_v40 = vcombine.high %v117_v37, %v117_v37  ;;  %v144_v43 = vrot.slane %v117_v37, %v87_v15 }
  0x2b   :  { %v134_v41 = vrot.slane %v120_v38, %v87_v15  ;;  %v135_v42 = vcombine.high %v127_v39, %v127_v39  ;;  %v163_v44 = vsel %vm162_vm1, %v127_v39, 0.0 }
  0x2c   :  { %v151_v49 = vrot.slane %v137_v40, %v87_v15  ;;  %v152_v50 = vcombine.high %v144_v43, %v144_v43  ;;  %v170_v53 = vsel %vm162_vm1, %v144_v43, 0.0 }
  0x2d   :  { %v136_v45 = vcombine.high %v134_v41, %v134_v41  ;;  %v164_v46 = vsel %vm162_vm1, %v135_v42, 0.0  ;;  %v166_v47 = vsel %vm162_vm1, %v134_v41, 0.0 }
  0x2e   :  { %v165_v48 = vadd.f32 %v164_v46, %v163_v44  ;;  %v153_v55 = vcombine.high %v151_v49, %v151_v49  ;;  %v172_v56 = vsel %vm162_vm1, %v152_v50, 0.0  ;;  %v174_v58 = vsel %vm162_vm1, %v151_v49, 0.0 }
  0x2f   :  { %v168_v51 = vsel %vm162_vm1, %v136_v45, 0.0 }
  0x30   :  { %v167_v52 = vadd.f32 %v166_v47, %v165_v48  ;;  %v176_v60 = vsel %vm162_vm1, %v153_v55, 0.0 }
  0x32   :  { %v169_v54 = vadd.f32 %v168_v51, %v167_v52 }
  0x34   :  { %v171_v57 = vadd.f32 %v170_v53, %v169_v54 }
  0x36   :  { %v173_v59 = vadd.f32 %v172_v56, %v171_v57 }
  0x38   :  { %v175_v61 = vadd.f32 %v174_v58, %v173_v59 }
  0x3a   :  { %v177_v62 = vadd.f32 %v176_v60, %v175_v61 }
  0x3c   :  { %178 = vadd.xlane.f32.xlu0 %v177_v62 }
  0xc5   :  { %v179_v0 = vpop.xlane.xlu0 %178 }
  0xc6   :  { %v180_v1 = vadd.f32 %v179_v0, %v46_v63 }
  0xc8   :  { %182 = vst.msk [vmem:[#allocation2] sm:$0x3] %vm41_vm0, %v180_v1 }
  0xcf   :  { %v186_v3 = vld [vmem:[#allocation2] sm:$0x3] }
  0xd0   :  { %v189_v4 = vadd.f32 %v188_v2, %v186_v3 }
  0xd2   :  { %v190_v5 = vsub.f32 0.0, %v189_v4 }
  0xd4   :  { %v191_v6 = vmul.f32 1.442695, %v190_v5 }
  0xd6   :  { %207 = vpow2.f32 %v191_v6 }
  0xe3   :  { %v208_v7 = vpop.eup %207 }
  0xe4   :  { %v193_v8 = vadd.f32 1.0, %v208_v7 }
  0xe6   :  { %209 = vrcp.f32 %v193_v8 }
  0xf3   :  { %v210_v9 = vpop.eup %209 }
  0xf4   :  { %196 = vst.msk [vmem:[%s305_s3] sm:$0x3] %vm41_vm0, %v210_v9 }
  0xf5   :  { %201 = vsyncpa [#allocation6], 1 }
  0xf6   :  { %202 = vsyncpa [#allocation8], 1 }

</bundles_post_ra>
